<compile_context>
chip_gen: v6e
topology: v6e:2x2x1
jax: 0.10.0
libtpu: 0.0.40
codegen_flags: <defaults>
</compile_context>

<pallas_src>
import functools
import math

import jax
import jax.numpy as jnp
from jax import lax
from jax.experimental import pallas as pl
from jax.experimental.pallas import tpu as pltpu

_LN_EPS = 1e-5
_NEG_INF = -1e30  # large negative instead of -inf: identical softmax result for any
                  # row with >=1 unmasked key, never produces inf-inf NaNs.


def _layer_norm(x, gamma, beta):
    """PyTorch-style LayerNorm over the last dim (population variance, eps=1e-5)."""
    mu = jnp.mean(x, axis=-1, keepdims=True)
    var = jnp.mean(jnp.square(x - mu), axis=-1, keepdims=True)
    return (x - mu) * lax.rsqrt(var + _LN_EPS) * gamma + beta


def _encoder_block_kernel(num_heads,
                          x_ref, mq_ref, mk_ref,
                          wqkv_ref, bqkv_ref, wo_ref, bo_ref,
                          g1_ref, beta1_ref,
                          w1_ref, b1_ref, w2_ref, b2_ref,
                          g2_ref, beta2_ref,
                          o_ref):
    # Per grid step (one batch element): x [T, D], mq [T, 1], mk [1, T].
    x_in = x_ref[...]
    T, D = x_in.shape
    H = num_heads
    hd = D // H
    scale = hd ** -0.5
    cdt = wqkv_ref.dtype          # MXU operand dtype (bf16 for production params)

    x_f32 = x_in.astype(jnp.float32)
    mq = mq_ref[...].astype(jnp.float32)                        # [T, 1] (1 = padded)
    key_bias = mk_ref[...].astype(jnp.float32) * _NEG_INF       # [1, T]

    # ---- MultiheadAttention --------------------------------------------------
    # x = x * (1 - mask) before the QKV projection (matches the reference).
    xm = (x_f32 * (1.0 - mq)).astype(cdt)
    qkv = jnp.dot(xm, wqkv_ref[...], preferred_element_type=jnp.float32)
    qkv = qkv + bqkv_ref[...].astype(jnp.float32)               # [T, 3D], f32 accum
    # Cast once: halves the largest live intermediate and makes all downstream
    # attention matmul operands MXU-native.
    qkv = qkv.astype(cdt)

    # wqkv/bqkv were pre-permuted in the wrapper to [Q_all | K_all | V_all] layout,
    # so q/k/v are contiguous slices; per-head channel order is head-major.
    q = qkv[:, :D].reshape(T, H, hd)
    k = qkv[:, D:2 * D].reshape(T, H, hd)
    v = qkv[:, 2 * D:].reshape(T, H, hd)

    # Batched-over-heads attention, f32 accumulation.
    logits = jnp.einsum('qhd,khd->hqk', q, k,
                        preferred_element_type=jnp.float32) * scale
    logits = logits + key_bias[None]                            # broadcast [1,1,Tk]
    logits = logits - jnp.max(logits, axis=-1, keepdims=True)
    pexp = jnp.exp(logits)
    inv_den = pl.reciprocal(jnp.sum(pexp, axis=-1, keepdims=True), approx=True)
    attn = (pexp * inv_den).astype(cdt)                         # [H, Tq, Tk]

    vals = jnp.einsum('hqk,khd->qhd', attn, v,
                      preferred_element_type=jnp.float32)       # [Tq, H, hd]
    vals = vals.reshape(T, D).astype(cdt)

    # Single full-contraction (K = D) output projection.
    attn_out = jnp.dot(vals, wo_ref[...], preferred_element_type=jnp.float32)
    attn_out = attn_out + bo_ref[...].astype(jnp.float32)

    # residual + norm1 (dropout p=0.0 -> identity)
    h1 = _layer_norm(x_f32 + attn_out,
                     g1_ref[...].astype(jnp.float32),
                     beta1_ref[...].astype(jnp.float32))

    # ---- feed-forward --------------------------------------------------------
    ff = jnp.dot(h1.astype(cdt), w1_ref[...],
                 preferred_element_type=jnp.float32) + b1_ref[...].astype(jnp.float32)
    ff = jnp.maximum(ff, 0.0)
    ff = jnp.dot(ff.astype(cdt), w2_ref[...],
                 preferred_element_type=jnp.float32) + b2_ref[...].astype(jnp.float32)

    out = _layer_norm(h1 + ff,
                      g2_ref[...].astype(jnp.float32),
                      beta2_ref[...].astype(jnp.float32))
    o_ref[...] = out.astype(o_ref.dtype)


def _vmem_limit_bytes():
    """Per-generation scoped-VMEM limit: ~3/4 of physical (48 MiB v7x, 96 MiB v5e/v6e)."""
    cap = None
    try:
        cap = getattr(pltpu.get_tpu_info(), "vmem_capacity_bytes", None)
    except Exception:
        cap = None
    if not cap:
        return 48 * 1024 * 1024          # conservative default (fits v7x's 64 MiB/TC)
    return int(min(cap * 3 // 4, 100 * 1024 * 1024))


def _batch_spec(arr):
    rest = tuple(arr.shape[1:])
    n = len(rest)
    return pl.BlockSpec((None,) + rest, lambda b, _n=n: (b,) + (0,) * _n)


def _const_spec(arr):
    """Constant-across-grid operand: resident once; single-buffered to halve VMEM."""
    shape = tuple(arr.shape)
    nd = arr.ndim
    idx = lambda b, _n=nd: (0,) * _n
    try:
        return pl.BlockSpec(shape, idx, pipeline_mode=pl.Buffered(1))
    except Exception:
        return pl.BlockSpec(shape, idx)


def encoder_block_pallas(x, mask, p, *, num_heads):
    """One EncoderBlock forward.  x: [B, T, D]; mask: [B, T] (1.0 = padding token)."""
    B, T, D = x.shape
    H = num_heads
    hd = D // H
    F = p['w1'].shape[1]

    # Pre-permute qkv projection columns (torch layout: per head [q|k|v] blocks of hd)
    # to [Q_all_heads | K_all_heads | V_all_heads] so in-kernel slices are contiguous.
    wqkv = jnp.transpose(p['wqkv'].reshape(D, H, 3, hd), (0, 2, 1, 3)).reshape(D, 3 * D)
    bqkv = jnp.transpose(p['bqkv'].reshape(1, H, 3, hd), (0, 2, 1, 3)).reshape(1, 3 * D)

    # Two pre-broadcast views of the mask so the kernel never needs a transpose:
    # per-query [B,T,1] (input zeroing) and per-key [B,1,T] (attention masking).
    m = mask.astype(jnp.float32)
    mq = m[:, :, None]
    mk = m[:, None, :]

    in_specs = [
        _batch_spec(x),
        _batch_spec(mq),
        _batch_spec(mk),
        _const_spec(wqkv), _const_spec(bqkv),
        _const_spec(p['wo']), _const_spec(p['bo']),
        _const_spec(p['gamma1']), _const_spec(p['beta1']),
        _const_spec(p['w1']), _const_spec(p['b1']),
        _const_spec(p['w2']), _const_spec(p['b2']),
        _const_spec(p['gamma2']), _const_spec(p['beta2']),
    ]
    out_specs = _batch_spec(x)

    # Advisory cost estimate (qkv + attention + o_proj + ffn).
    flops = B * (8 * T * D * D + 4 * T * T * D + 4 * T * D * F)
    transcendentals = B * num_heads * T * T + 2 * B * T
    param_bytes = sum(int(v.size) * v.dtype.itemsize for v in p.values())
    bytes_accessed = (2 * int(x.size) * x.dtype.itemsize
                      + 2 * int(m.size) * m.dtype.itemsize + param_bytes)

    kernel = functools.partial(_encoder_block_kernel, num_heads)
    return pl.pallas_call(
        kernel,
        out_shape=jax.ShapeDtypeStruct((B, T, D), x.dtype),
        grid_spec=pltpu.PrefetchScalarGridSpec(
            num_scalar_prefetch=0,
            grid=(B,),
            in_specs=in_specs,
            out_specs=out_specs,
        ),
        compiler_params=pltpu.CompilerParams(
            dimension_semantics=("parallel",),      # megacore-shard the batch axis
            vmem_limit_bytes=_vmem_limit_bytes(),
        ),
        cost_estimate=pl.CostEstimate(
            flops=int(flops),
            transcendentals=int(transcendentals),
            bytes_accessed=int(bytes_accessed)),
    )(x, mq, mk,
      wqkv, bqkv, p['wo'], p['bo'],
      p['gamma1'], p['beta1'],
      p['w1'], p['b1'], p['w2'], p['b2'],
      p['gamma2'], p['beta2'])


def transformer_encoder(x, mask, layer_params, *, num_heads):
    for p in layer_params:
        x = encoder_block_pallas(x, mask, p, num_heads=num_heads)
    return x


# ------------------------- parameter init (PyTorch-equivalent) ---------------------
def init_encoder_params(key, num_layers, input_dim, num_heads, dim_feedforward,
                        dtype=jnp.float32):
    """Weights stored as (in_dim, out_dim) == torch weight.T so kernels do x @ W + b.
    For production, pass dtype=jnp.bfloat16 (accumulation stays f32 in-kernel)."""
    assert input_dim % num_heads == 0
    D, E, F = input_dim, input_dim, dim_feedforward
    layers = []
    for _ in range(num_layers):
        key, k_qkv, k_o, k_w1, k_b1, k_w2, k_b2 = jax.random.split(key, 7)
        xav_qkv = math.sqrt(6.0 / (D + 3 * E))
        xav_o = math.sqrt(6.0 / (E + E))
        lin1 = 1.0 / math.sqrt(D)
        lin2 = 1.0 / math.sqrt(F)
        layers.append(dict(
            wqkv=jax.random.uniform(k_qkv, (D, 3 * E), dtype, -xav_qkv, xav_qkv),
            bqkv=jnp.zeros((1, 3 * E), dtype),
            wo=jax.random.uniform(k_o, (E, E), dtype, -xav_o, xav_o),
            bo=jnp.zeros((1, E), dtype),
            gamma1=jnp.ones((1, D), dtype), beta1=jnp.zeros((1, D), dtype),
            w1=jax.random.uniform(k_w1, (D, F), dtype, -lin1, lin1),
            b1=jax.random.uniform(k_b1, (1, F), dtype, -lin1, lin1),
            w2=jax.random.uniform(k_w2, (F, D), dtype, -lin2, lin2),
            b2=jax.random.uniform(k_b2, (1, D), dtype, -lin2, lin2),
            gamma2=jnp.ones((1, D), dtype), beta2=jnp.zeros((1, D), dtype),
        ))
    return layers


# ------------------------- pure-JAX reference (for verification) -------------------
def _reference_block(x, mask, p, num_heads):
    B, T, D = x.shape
    hd = D // num_heads
    xm = x * (1.0 - mask[..., None])
    qkv = xm @ p['wqkv'] + p['bqkv'][0]
    qkv = qkv.reshape(B, T, num_heads, 3, hd)
    q = jnp.transpose(qkv[..., 0, :], (0, 2, 1, 3))
    k = jnp.transpose(qkv[..., 1, :], (0, 2, 1, 3))
    v = jnp.transpose(qkv[..., 2, :], (0, 2, 1, 3))
    logits = jnp.einsum('bhqd,bhkd->bhqk', q, k) * (hd ** -0.5)
    logits = logits + mask[:, None, None, :] * _NEG_INF
    logits = logits - jnp.max(logits, axis=-1, keepdims=True)
    e = jnp.exp(logits)
    attn = e / jnp.sum(e, axis=-1, keepdims=True)
    vals = jnp.einsum('bhqk,bhkd->bhqd', attn, v)
    vals = jnp.transpose(vals, (0, 2, 1, 3)).reshape(B, T, D)
    attn_out = vals @ p['wo'] + p['bo'][0]
    x = _layer_norm(x + attn_out, p['gamma1'], p['beta1'])
    ff = jnp.maximum(x @ p['w1'] + p['b1'][0], 0.0) @ p['w2'] + p['b2'][0]
    return _layer_norm(x + ff, p['gamma2'], p['beta2'])


def _reference_encoder(x, mask, layer_params, num_heads):
    for p in layer_params:
        x = _reference_block(x, mask, p, num_heads)
    return x


if __name__ == "__main__":
    B, T, D = 2, 8, 32            # batch, seq, input_dim (== embed_dim)
    num_heads, dim_ff = 4, 64
    num_layers = 2

    key = jax.random.PRNGKey(0)
    k_x, k_p = jax.random.split(key)
    x = jax.random.normal(k_x, (B, T, D), jnp.float32)
    # padding mask: 1.0 marks padded tokens (last two tokens of batch element 1)
    mask = jnp.zeros((B, T), jnp.float32).at[1, 6:].set(1.0)

    params = init_encoder_params(k_p, num_layers, D, num_heads, dim_ff)

    out = transformer_encoder(x, mask, params, num_heads=num_heads)
    out = jax.block_until_ready(out)
    assert out.shape == (B, T, D), out.shape

    ref = _reference_encoder(x, mask, params, num_heads)
    max_err = float(jnp.max(jnp.abs(out - ref)))
    # Tolerance accounts for the approximate (EUP) reciprocal in the softmax denom.
    assert jnp.allclose(out, ref, atol=1e-2, rtol=1e-2), f"mismatch vs reference: {max_err}"

    # bf16-parameter smoke run: exercises the native-MXU bf16 operand path.
    params_bf16 = jax.tree_util.tree_map(lambda a: a.astype(jnp.bfloat16), params)
    out_bf16 = transformer_encoder(x.astype(jnp.bfloat16), mask, params_bf16,
                                   num_heads=num_heads)
    out_bf16 = jax.block_until_ready(out_bf16)
    assert out_bf16.shape == (B, T, D), out_bf16.shape
    assert bool(jnp.all(jnp.isfinite(out_bf16.astype(jnp.float32))))

    print("KERNEL_OK")
</pallas_src>

<mosaic_0001>
module attributes {stable_mosaic.version = 11 : i64} {
  func.func @_encoder_block_kernel(%arg0: i32, %arg1: memref<1x8x32xf32, #tpu.memory_space<vmem>>, %arg2: memref<1x8x1xf32, #tpu.memory_space<vmem>>, %arg3: memref<1x1x8xf32, #tpu.memory_space<vmem>>, %arg4: memref<32x96xf32, #tpu.memory_space<vmem>>, %arg5: memref<1x96xf32, #tpu.memory_space<vmem>>, %arg6: memref<32x32xf32, #tpu.memory_space<vmem>>, %arg7: memref<1x32xf32, #tpu.memory_space<vmem>>, %arg8: memref<1x32xf32, #tpu.memory_space<vmem>>, %arg9: memref<1x32xf32, #tpu.memory_space<vmem>>, %arg10: memref<32x64xf32, #tpu.memory_space<vmem>>, %arg11: memref<1x64xf32, #tpu.memory_space<vmem>>, %arg12: memref<64x32xf32, #tpu.memory_space<vmem>>, %arg13: memref<1x32xf32, #tpu.memory_space<vmem>>, %arg14: memref<1x32xf32, #tpu.memory_space<vmem>>, %arg15: memref<1x32xf32, #tpu.memory_space<vmem>>, %arg16: memref<1x8x32xf32, #tpu.memory_space<vmem>>) attributes {dimension_semantics = [#tpu.dimension_semantics<parallel>], iteration_bounds = array<i64: 2>, scalar_prefetch = 0 : i64, scratch_operands = 0 : i64, tpu.core_type = #tpu.core_type<tc>, window_params = [{transform_indices = @transform_0, window_bounds = array<i64: 1, 8, 32>}, {transform_indices = @transform_1, window_bounds = array<i64: 1, 8, 1>}, {transform_indices = @transform_2, window_bounds = array<i64: 1, 1, 8>}, {pipeline_mode = #tpu.pipeline_mode<synchronous>, transform_indices = @transform_3, window_bounds = array<i64: 32, 96>}, {pipeline_mode = #tpu.pipeline_mode<synchronous>, transform_indices = @transform_4, window_bounds = array<i64: 1, 96>}, {pipeline_mode = #tpu.pipeline_mode<synchronous>, transform_indices = @transform_5, window_bounds = array<i64: 32, 32>}, {pipeline_mode = #tpu.pipeline_mode<synchronous>, transform_indices = @transform_6, window_bounds = array<i64: 1, 32>}, {pipeline_mode = #tpu.pipeline_mode<synchronous>, transform_indices = @transform_7, window_bounds = array<i64: 1, 32>}, {pipeline_mode = #tpu.pipeline_mode<synchronous>, transform_indices = @transform_8, window_bounds = array<i64: 1, 32>}, {pipeline_mode = #tpu.pipeline_mode<synchronous>, transform_indices = @transform_9, window_bounds = array<i64: 32, 64>}, {pipeline_mode = #tpu.pipeline_mode<synchronous>, transform_indices = @transform_10, window_bounds = array<i64: 1, 64>}, {pipeline_mode = #tpu.pipeline_mode<synchronous>, transform_indices = @transform_11, window_bounds = array<i64: 64, 32>}, {pipeline_mode = #tpu.pipeline_mode<synchronous>, transform_indices = @transform_12, window_bounds = array<i64: 1, 32>}, {pipeline_mode = #tpu.pipeline_mode<synchronous>, transform_indices = @transform_13, window_bounds = array<i64: 1, 32>}, {pipeline_mode = #tpu.pipeline_mode<synchronous>, transform_indices = @transform_14, window_bounds = array<i64: 1, 32>}, {transform_indices = @transform_15, window_bounds = array<i64: 1, 8, 32>}]} {
    %c0 = arith.constant 0 : index
    %c0_0 = arith.constant 0 : index
    %c0_1 = arith.constant 0 : index
    %0 = vector.load %arg1[%c0, %c0_0, %c0_1] : memref<1x8x32xf32, #tpu.memory_space<vmem>>, vector<1x8x32xf32>
    %1 = vector.shape_cast %0 : vector<1x8x32xf32> to vector<8x32xf32>
    %c0_2 = arith.constant 0 : index
    %c0_3 = arith.constant 0 : index
    %c0_4 = arith.constant 0 : index
    %2 = vector.load %arg2[%c0_2, %c0_3, %c0_4] : memref<1x8x1xf32, #tpu.memory_space<vmem>>, vector<1x8x1xf32>
    %3 = vector.shape_cast %2 : vector<1x8x1xf32> to vector<8x1xf32>
    %c0_5 = arith.constant 0 : index
    %c0_6 = arith.constant 0 : index
    %c0_7 = arith.constant 0 : index
    %4 = vector.load %arg3[%c0_5, %c0_6, %c0_7] : memref<1x1x8xf32, #tpu.memory_space<vmem>>, vector<1x1x8xf32>
    %5 = vector.shape_cast %4 : vector<1x1x8xf32> to vector<1x8xf32>
    %cst = arith.constant -1.000000e+30 : f32
    %6 = vector.broadcast %cst : f32 to vector<1x8xf32>
    %7 = arith.mulf %5, %6 : vector<1x8xf32>
    %cst_8 = arith.constant 1.000000e+00 : f32
    %8 = vector.broadcast %cst_8 : f32 to vector<8x1xf32>
    %9 = arith.subf %8, %3 : vector<8x1xf32>
    %10 = vector.broadcast %9 : vector<8x1xf32> to vector<8x32xf32>
    %11 = arith.mulf %1, %10 : vector<8x32xf32>
    %c0_9 = arith.constant 0 : index
    %c0_10 = arith.constant 0 : index
    %12 = vector.load %arg4[%c0_9, %c0_10] : memref<32x96xf32, #tpu.memory_space<vmem>>, vector<32x96xf32>
    %cst_11 = arith.constant dense<0.000000e+00> : vector<8x96xf32>
    %13 = tpu.matmul %11, %12, %cst_11 {dimension_numbers = #tpu.dot_dimension_numbers<[1], [0], [0], [1], [0, 0, 1, 1], [], []>} : vector<8x32xf32>, vector<32x96xf32>, vector<8x96xf32> -> vector<8x96xf32>
    %c0_12 = arith.constant 0 : index
    %c0_13 = arith.constant 0 : index
    %14 = vector.load %arg5[%c0_12, %c0_13] : memref<1x96xf32, #tpu.memory_space<vmem>>, vector<1x96xf32>
    %15 = vector.broadcast %14 : vector<1x96xf32> to vector<8x96xf32>
    %16 = arith.addf %13, %15 : vector<8x96xf32>
    %17 = vector.extract_strided_slice %16 {offsets = [0, 0], sizes = [8, 32], strides = [1, 1]} : vector<8x96xf32> to vector<8x32xf32>
    %18 = vector.shape_cast %17 : vector<8x32xf32> to vector<8x4x8xf32>
    %19 = vector.extract_strided_slice %16 {offsets = [0, 32], sizes = [8, 32], strides = [1, 1]} : vector<8x96xf32> to vector<8x32xf32>
    %20 = vector.shape_cast %19 : vector<8x32xf32> to vector<8x4x8xf32>
    %21 = vector.extract_strided_slice %16 {offsets = [0, 64], sizes = [8, 32], strides = [1, 1]} : vector<8x96xf32> to vector<8x32xf32>
    %22 = vector.shape_cast %21 : vector<8x32xf32> to vector<8x4x8xf32>
    "tpu.trace_start"() <{level = 10 : i32, message = "qhd,khd->hqk"}> : () -> ()
    %cst_14 = arith.constant dense<0.000000e+00> : vector<4x8x8xf32>
    %23 = tpu.matmul %18, %20, %cst_14 {dimension_numbers = #tpu.dot_dimension_numbers<[2], [2], [0], [0], [0, 1, 0, 0, 1, 0], [1], [1]>} : vector<8x4x8xf32>, vector<8x4x8xf32>, vector<4x8x8xf32> -> vector<4x8x8xf32>
    "tpu.trace_stop"() : () -> ()
    %cst_15 = arith.constant 0.353553385 : f32
    %24 = vector.broadcast %cst_15 : f32 to vector<4x8x8xf32>
    %25 = arith.mulf %23, %24 : vector<4x8x8xf32>
    %26 = vector.shape_cast %7 : vector<1x8xf32> to vector<1x1x8xf32>
    %27 = vector.broadcast %26 : vector<1x1x8xf32> to vector<4x8x8xf32>
    %28 = arith.addf %25, %27 : vector<4x8x8xf32>
    %cst_16 = arith.constant dense<0xFF800000> : vector<4x8xf32>
    %29 = vector.multi_reduction <maximumf>, %28, %cst_16 [2] : vector<4x8x8xf32> to vector<4x8xf32>
    %30 = vector.shape_cast %29 : vector<4x8xf32> to vector<4x8x1xf32>
    %31 = vector.broadcast %30 : vector<4x8x1xf32> to vector<4x8x8xf32>
    %32 = arith.subf %28, %31 : vector<4x8x8xf32>
    %33 = math.exp %32 : vector<4x8x8xf32>
    %cst_17 = arith.constant dense<0.000000e+00> : vector<4x8xf32>
    %34 = vector.multi_reduction <add>, %33, %cst_17 [2] : vector<4x8x8xf32> to vector<4x8xf32>
    %35 = vector.shape_cast %34 : vector<4x8xf32> to vector<4x8x1xf32>
    %36 = tpu.reciprocal %35 {approx = true} : vector<4x8x1xf32> -> vector<4x8x1xf32>
    %37 = vector.broadcast %36 : vector<4x8x1xf32> to vector<4x8x8xf32>
    %38 = arith.mulf %33, %37 : vector<4x8x8xf32>
    "tpu.trace_start"() <{level = 10 : i32, message = "hqk,khd->qhd"}> : () -> ()
    %cst_18 = arith.constant dense<0.000000e+00> : vector<4x8x8xf32>
    %39 = tpu.matmul %22, %38, %cst_18 {dimension_numbers = #tpu.dot_dimension_numbers<[0], [2], [2], [1], [0, 1, 0, 2, 1, 1], [1], [0]>} : vector<8x4x8xf32>, vector<4x8x8xf32>, vector<4x8x8xf32> -> vector<4x8x8xf32>
    %40 = tpu.transpose %39, [2, 0, 1] : vector<4x8x8xf32> -> vector<8x4x8xf32>
    "tpu.trace_stop"() : () -> ()
    %41 = vector.shape_cast %40 : vector<8x4x8xf32> to vector<8x32xf32>
    %c0_19 = arith.constant 0 : index
    %c0_20 = arith.constant 0 : index
    %42 = vector.load %arg6[%c0_19, %c0_20] : memref<32x32xf32, #tpu.memory_space<vmem>>, vector<32x32xf32>
    %cst_21 = arith.constant dense<0.000000e+00> : vector<8x32xf32>
    %43 = tpu.matmul %41, %42, %cst_21 {dimension_numbers = #tpu.dot_dimension_numbers<[1], [0], [0], [1], [0, 0, 1, 1], [], []>} : vector<8x32xf32>, vector<32x32xf32>, vector<8x32xf32> -> vector<8x32xf32>
    %c0_22 = arith.constant 0 : index
    %c0_23 = arith.constant 0 : index
    %44 = vector.load %arg7[%c0_22, %c0_23] : memref<1x32xf32, #tpu.memory_space<vmem>>, vector<1x32xf32>
    %45 = vector.broadcast %44 : vector<1x32xf32> to vector<8x32xf32>
    %46 = arith.addf %43, %45 : vector<8x32xf32>
    %47 = arith.addf %1, %46 : vector<8x32xf32>
    %c0_24 = arith.constant 0 : index
    %c0_25 = arith.constant 0 : index
    %48 = vector.load %arg8[%c0_24, %c0_25] : memref<1x32xf32, #tpu.memory_space<vmem>>, vector<1x32xf32>
    %c0_26 = arith.constant 0 : index
    %c0_27 = arith.constant 0 : index
    %49 = vector.load %arg9[%c0_26, %c0_27] : memref<1x32xf32, #tpu.memory_space<vmem>>, vector<1x32xf32>
    %cst_28 = arith.constant dense<0.000000e+00> : vector<8xf32>
    %50 = vector.multi_reduction <add>, %47, %cst_28 [1] : vector<8x32xf32> to vector<8xf32>
    %51 = vector.shape_cast %50 : vector<8xf32> to vector<8x1xf32>
    %cst_29 = arith.constant 3.200000e+01 : f32
    %52 = vector.broadcast %cst_29 : f32 to vector<8x1xf32>
    %53 = arith.divf %51, %52 : vector<8x1xf32>
    %54 = vector.broadcast %53 : vector<8x1xf32> to vector<8x32xf32>
    %55 = arith.subf %47, %54 : vector<8x32xf32>
    %56 = arith.mulf %55, %55 : vector<8x32xf32>
    %cst_30 = arith.constant dense<0.000000e+00> : vector<8xf32>
    %57 = vector.multi_reduction <add>, %56, %cst_30 [1] : vector<8x32xf32> to vector<8xf32>
    %58 = vector.shape_cast %57 : vector<8xf32> to vector<8x1xf32>
    %cst_31 = arith.constant 3.200000e+01 : f32
    %59 = vector.broadcast %cst_31 : f32 to vector<8x1xf32>
    %60 = arith.divf %58, %59 : vector<8x1xf32>
    %61 = vector.broadcast %53 : vector<8x1xf32> to vector<8x32xf32>
    %62 = arith.subf %47, %61 : vector<8x32xf32>
    %cst_32 = arith.constant 9.99999974E-6 : f32
    %63 = vector.broadcast %cst_32 : f32 to vector<8x1xf32>
    %64 = arith.addf %60, %63 : vector<8x1xf32>
    %65 = math.rsqrt %64 : vector<8x1xf32>
    %66 = vector.broadcast %65 : vector<8x1xf32> to vector<8x32xf32>
    %67 = arith.mulf %62, %66 : vector<8x32xf32>
    %68 = vector.broadcast %48 : vector<1x32xf32> to vector<8x32xf32>
    %69 = arith.mulf %67, %68 : vector<8x32xf32>
    %70 = vector.broadcast %49 : vector<1x32xf32> to vector<8x32xf32>
    %71 = arith.addf %69, %70 : vector<8x32xf32>
    %c0_33 = arith.constant 0 : index
    %c0_34 = arith.constant 0 : index
    %72 = vector.load %arg10[%c0_33, %c0_34] : memref<32x64xf32, #tpu.memory_space<vmem>>, vector<32x64xf32>
    %cst_35 = arith.constant dense<0.000000e+00> : vector<8x64xf32>
    %73 = tpu.matmul %71, %72, %cst_35 {dimension_numbers = #tpu.dot_dimension_numbers<[1], [0], [0], [1], [0, 0, 1, 1], [], []>} : vector<8x32xf32>, vector<32x64xf32>, vector<8x64xf32> -> vector<8x64xf32>
    %c0_36 = arith.constant 0 : index
    %c0_37 = arith.constant 0 : index
    %74 = vector.load %arg11[%c0_36, %c0_37] : memref<1x64xf32, #tpu.memory_space<vmem>>, vector<1x64xf32>
    %75 = vector.broadcast %74 : vector<1x64xf32> to vector<8x64xf32>
    %76 = arith.addf %73, %75 : vector<8x64xf32>
    %cst_38 = arith.constant 0.000000e+00 : f32
    %77 = vector.broadcast %cst_38 : f32 to vector<8x64xf32>
    %78 = arith.maximumf %76, %77 : vector<8x64xf32>
    %c0_39 = arith.constant 0 : index
    %c0_40 = arith.constant 0 : index
    %79 = vector.load %arg12[%c0_39, %c0_40] : memref<64x32xf32, #tpu.memory_space<vmem>>, vector<64x32xf32>
    %cst_41 = arith.constant dense<0.000000e+00> : vector<8x32xf32>
    %80 = tpu.matmul %78, %79, %cst_41 {dimension_numbers = #tpu.dot_dimension_numbers<[1], [0], [0], [1], [0, 0, 1, 1], [], []>} : vector<8x64xf32>, vector<64x32xf32>, vector<8x32xf32> -> vector<8x32xf32>
    %c0_42 = arith.constant 0 : index
    %c0_43 = arith.constant 0 : index
    %81 = vector.load %arg13[%c0_42, %c0_43] : memref<1x32xf32, #tpu.memory_space<vmem>>, vector<1x32xf32>
    %82 = vector.broadcast %81 : vector<1x32xf32> to vector<8x32xf32>
    %83 = arith.addf %80, %82 : vector<8x32xf32>
    %84 = arith.addf %71, %83 : vector<8x32xf32>
    %c0_44 = arith.constant 0 : index
    %c0_45 = arith.constant 0 : index
    %85 = vector.load %arg14[%c0_44, %c0_45] : memref<1x32xf32, #tpu.memory_space<vmem>>, vector<1x32xf32>
    %c0_46 = arith.constant 0 : index
    %c0_47 = arith.constant 0 : index
    %86 = vector.load %arg15[%c0_46, %c0_47] : memref<1x32xf32, #tpu.memory_space<vmem>>, vector<1x32xf32>
    %cst_48 = arith.constant dense<0.000000e+00> : vector<8xf32>
    %87 = vector.multi_reduction <add>, %84, %cst_48 [1] : vector<8x32xf32> to vector<8xf32>
    %88 = vector.shape_cast %87 : vector<8xf32> to vector<8x1xf32>
    %cst_49 = arith.constant 3.200000e+01 : f32
    %89 = vector.broadcast %cst_49 : f32 to vector<8x1xf32>
    %90 = arith.divf %88, %89 : vector<8x1xf32>
    %91 = vector.broadcast %90 : vector<8x1xf32> to vector<8x32xf32>
    %92 = arith.subf %84, %91 : vector<8x32xf32>
    %93 = arith.mulf %92, %92 : vector<8x32xf32>
    %cst_50 = arith.constant dense<0.000000e+00> : vector<8xf32>
    %94 = vector.multi_reduction <add>, %93, %cst_50 [1] : vector<8x32xf32> to vector<8xf32>
    %95 = vector.shape_cast %94 : vector<8xf32> to vector<8x1xf32>
    %cst_51 = arith.constant 3.200000e+01 : f32
    %96 = vector.broadcast %cst_51 : f32 to vector<8x1xf32>
    %97 = arith.divf %95, %96 : vector<8x1xf32>
    %98 = vector.broadcast %90 : vector<8x1xf32> to vector<8x32xf32>
    %99 = arith.subf %84, %98 : vector<8x32xf32>
    %cst_52 = arith.constant 9.99999974E-6 : f32
    %100 = vector.broadcast %cst_52 : f32 to vector<8x1xf32>
    %101 = arith.addf %97, %100 : vector<8x1xf32>
    %102 = math.rsqrt %101 : vector<8x1xf32>
    %103 = vector.broadcast %102 : vector<8x1xf32> to vector<8x32xf32>
    %104 = arith.mulf %99, %103 : vector<8x32xf32>
    %105 = vector.broadcast %85 : vector<1x32xf32> to vector<8x32xf32>
    %106 = arith.mulf %104, %105 : vector<8x32xf32>
    %107 = vector.broadcast %86 : vector<1x32xf32> to vector<8x32xf32>
    %108 = arith.addf %106, %107 : vector<8x32xf32>
    %c0_53 = arith.constant 0 : index
    %c0_54 = arith.constant 0 : index
    %c0_55 = arith.constant 0 : index
    %109 = vector.load %arg16[%c0_53, %c0_54, %c0_55] : memref<1x8x32xf32, #tpu.memory_space<vmem>>, vector<1x8x32xf32>
    %110 = vector.shape_cast %109 : vector<1x8x32xf32> to vector<8x32xf32>
    %111 = vector.shape_cast %108 : vector<8x32xf32> to vector<1x8x32xf32>
    tpu.vector_store %arg16[%c0_53, %c0_54, %c0_55], %111 {strides = array<i32>} : memref<1x8x32xf32, #tpu.memory_space<vmem>>, vector<1x8x32xf32>,
    return
  }
  func.func @transform_0(%arg0: i32) -> (i32, i32, i32) {
    %c0_i32 = arith.constant 0 : i32
    %c0_i32_0 = arith.constant 0 : i32
    %c0_i32_1 = arith.constant 0 : i32
    return %arg0, %c0_i32, %c0_i32_0 : i32, i32, i32
  }
  func.func @transform_1(%arg0: i32) -> (i32, i32, i32) {
    %c0_i32 = arith.constant 0 : i32
    %c0_i32_0 = arith.constant 0 : i32
    %c0_i32_1 = arith.constant 0 : i32
    return %arg0, %c0_i32, %c0_i32_0 : i32, i32, i32
  }
  func.func @transform_2(%arg0: i32) -> (i32, i32, i32) {
    %c0_i32 = arith.constant 0 : i32
    %c0_i32_0 = arith.constant 0 : i32
    %c0_i32_1 = arith.constant 0 : i32
    return %arg0, %c0_i32, %c0_i32_0 : i32, i32, i32
  }
  func.func @transform_3(%arg0: i32) -> (i32, i32) {
    %c0_i32 = arith.constant 0 : i32
    %c0_i32_0 = arith.constant 0 : i32
    %c0_i32_1 = arith.constant 0 : i32
    return %c0_i32, %c0_i32_0 : i32, i32
  }
  func.func @transform_4(%arg0: i32) -> (i32, i32) {
    %c0_i32 = arith.constant 0 : i32
    %c0_i32_0 = arith.constant 0 : i32
    %c0_i32_1 = arith.constant 0 : i32
    return %c0_i32, %c0_i32_0 : i32, i32
  }
  func.func @transform_5(%arg0: i32) -> (i32, i32) {
    %c0_i32 = arith.constant 0 : i32
    %c0_i32_0 = arith.constant 0 : i32
    %c0_i32_1 = arith.constant 0 : i32
    return %c0_i32, %c0_i32_0 : i32, i32
  }
  func.func @transform_6(%arg0: i32) -> (i32, i32) {
    %c0_i32 = arith.constant 0 : i32
    %c0_i32_0 = arith.constant 0 : i32
    %c0_i32_1 = arith.constant 0 : i32
    return %c0_i32, %c0_i32_0 : i32, i32
  }
  func.func @transform_7(%arg0: i32) -> (i32, i32) {
    %c0_i32 = arith.constant 0 : i32
    %c0_i32_0 = arith.constant 0 : i32
    %c0_i32_1 = arith.constant 0 : i32
    return %c0_i32, %c0_i32_0 : i32, i32
  }
  func.func @transform_8(%arg0: i32) -> (i32, i32) {
    %c0_i32 = arith.constant 0 : i32
    %c0_i32_0 = arith.constant 0 : i32
    %c0_i32_1 = arith.constant 0 : i32
    return %c0_i32, %c0_i32_0 : i32, i32
  }
  func.func @transform_9(%arg0: i32) -> (i32, i32) {
    %c0_i32 = arith.constant 0 : i32
    %c0_i32_0 = arith.constant 0 : i32
    %c0_i32_1 = arith.constant 0 : i32
    return %c0_i32, %c0_i32_0 : i32, i32
  }
  func.func @transform_10(%arg0: i32) -> (i32, i32) {
    %c0_i32 = arith.constant 0 : i32
    %c0_i32_0 = arith.constant 0 : i32
    %c0_i32_1 = arith.constant 0 : i32
    return %c0_i32, %c0_i32_0 : i32, i32
  }
  func.func @transform_11(%arg0: i32) -> (i32, i32) {
    %c0_i32 = arith.constant 0 : i32
    %c0_i32_0 = arith.constant 0 : i32
    %c0_i32_1 = arith.constant 0 : i32
    return %c0_i32, %c0_i32_0 : i32, i32
  }
  func.func @transform_12(%arg0: i32) -> (i32, i32) {
    %c0_i32 = arith.constant 0 : i32
    %c0_i32_0 = arith.constant 0 : i32
    %c0_i32_1 = arith.constant 0 : i32
    return %c0_i32, %c0_i32_0 : i32, i32
  }
  func.func @transform_13(%arg0: i32) -> (i32, i32) {
    %c0_i32 = arith.constant 0 : i32
    %c0_i32_0 = arith.constant 0 : i32
    %c0_i32_1 = arith.constant 0 : i32
    return %c0_i32, %c0_i32_0 : i32, i32
  }
  func.func @transform_14(%arg0: i32) -> (i32, i32) {
    %c0_i32 = arith.constant 0 : i32
    %c0_i32_0 = arith.constant 0 : i32
    %c0_i32_1 = arith.constant 0 : i32
    return %c0_i32, %c0_i32_0 : i32, i32
  }
  func.func @transform_15(%arg0: i32) -> (i32, i32, i32) {
    %c0_i32 = arith.constant 0 : i32
    %c0_i32_0 = arith.constant 0 : i32
    %c0_i32_1 = arith.constant 0 : i32
    return %arg0, %c0_i32, %c0_i32_0 : i32, i32, i32
  }
}

</mosaic_0001>

<bundles_post_ra>
// kernel: tpu_custom_call.1
= control target key start
LH: loop header
LB: loop body
LE: loop exit
PB: predicated region body
PF: predicated region fallthrough
CT: control target
= control target key end

     0   :  { %s3167_s0 = inlined_call_operand.hbm [shape: f32[2,8,32], index: 0, kind: input, shape index: {}]   ;;  %s3168_s1 = inlined_call_operand.vmem [shape: f32[2,8,1], index: 1, kind: input, shape index: {}]   ;;  %s3169_s2 = inlined_call_operand.vmem [shape: f32[2,1,8], index: 2, kind: input, shape index: {}]   ;;  %s3170_s3 = inlined_call_operand.vmem [shape: f32[32,96], index: 3, kind: input, shape index: {}]   ;;  %s3171_s4 = inlined_call_operand.vmem [shape: f32[1,96], index: 4, kind: input, shape index: {}]   ;;  %s3172_s5 = inlined_call_operand.vmem [shape: f32[32,32], index: 5, kind: input, shape index: {}]   ;;  %s3173_s6 = inlined_call_operand.vmem [shape: f32[1,32], index: 6, kind: input, shape index: {}]   ;;  %s3174_s7 = inlined_call_operand.vmem [shape: f32[1,32], index: 7, kind: input, shape index: {}]   ;;  %s3175_s8 = inlined_call_operand.vmem [shape: f32[1,32], index: 8, kind: input, shape index: {}]   ;;  %s3176_s9 = inlined_call_operand.vmem [shape: f32[32,64], index: 9, kind: input, shape index: {}]   ;;  %s3177_s10 = inlined_call_operand.hbm [shape: f32[1,64], index: 10, kind: input, shape index: {}]   ;;  %s3178_s11 = inlined_call_operand.vmem [shape: f32[64,32], index: 11, kind: input, shape index: {}]   ;;  %s3179_s12 = inlined_call_operand.vmem [shape: f32[1,32], index: 12, kind: input, shape index: {}]   ;;  %s3180_s13 = inlined_call_operand.vmem [shape: f32[1,32], index: 13, kind: input, shape index: {}]   ;;  %s3181_s14 = inlined_call_operand.vmem [shape: f32[1,32], index: 14, kind: input, shape index: {}]   ;;  %s3182_s15 = inlined_call_operand.hbm [shape: f32[2,8,32], index: 15, kind: output, shape index: {}]  }
   0x1   :  { %3194 = sst [smem:[#allocation17_spill]] %s3177_s10 }
   0x2   :  { %3195 = sst [smem:[#allocation18_spill]] %s3180_s13 }
   0x3   :  { %3196 = sst [smem:[#allocation19_spill]] %s3181_s14 }
   0x4   :  { %3197 = sst [smem:[#allocation20_spill]] %s3182_s15 }
   0x5   :  { %20 = vsyncpa [#allocation3], 0 }
   0x6   :  { %22 = vsyncpa [#allocation3 + $0x1], 0 }
   0x7   :  { %23 = vsyncpa [#allocation6], 0 }
   0x8   :  { %24 = vsyncpa [#allocation4], 0 }
   0x9   :  { %26 = vsyncpa [#allocation4 + $0x1], 0  ;;  %s2788_s18 = smov 0   ;;  %s2790_s19 = smov 0  }
   0xa   :  { %s2792_s20 = smov 0   ;;  %s2794_s21 = smov 0  }
   0xb LB: > { %3198 = sst [smem:[#allocation11_spill]] %s2678_s18  ;;  %s2809_s22 = sadd.s32 4294967295, %s2690_s21   ;;  %s2690_s21 = sphi %s2794_s21, %s3226_s21   ;;  %s2686_s20 = sphi %s2792_s20, %s3228_s20   ;;  %s2682_s19 = sphi %s2790_s19, %s3230_s19   ;;  %s2678_s18 = sphi %s2788_s18, %s3229_s18  }
   0xc   : > { %3199 = sst [smem:[#allocation12_spill]] %s2686_s20  ;;  %s2304_s23 = sadd.s32 4294967294, %s2690_s21  }
   0xd   : > { %3200 = sst [smem:[#allocation13_spill]] %s2690_s21  ;;  %p52_p0 = scmp.ne.s32.totalorder %s2682_s19, %s2678_s18 }
   0xe   : > { %p3184_p1 = scmp.eq.s32.totalorder %s2809_s22, 0  ;;  %p386_p3 = scmp.eq.s32.totalorder %s2304_s23, 1 }
   0xf   : > { %p2305_p5 = scmp.ge.s32.totalorder %s2690_s21, 1  ;;  %p393_p7 = scmp.lt.s32.totalorder %s2690_s21, 3 }
  0x10   : > { %p2818_p4 = por %p3184_p1, %p52_p0  ;;  %p2823_p6 = por %p386_p3, %p52_p0 }
  0x11   : > { %p2828_p8 = pnand %p2305_p5, %p393_p7  ;;  %s2692_s27 = smov [#allocation5]  }
  0x12   : > { %s3201_s24 = scalar_select %p2818_p4, 1, 0 }
  0x13   : > { %s3202_s25 = scalar_select %p2823_p6, 1, 0 }
  0x14   : > { %s3204_s26 = scalar_select %p2828_p8, 1, 0 }
  0x15   : > { %3203 = sst [smem:[#allocation14_spill]] %s3202_s25  ;;  %s427_s28 = sshll.u32 %s2692_s27, 4  ;;  %s428_s28 = int_to_ptr.vmem [resolvable:$true] %s427_s28 }
  0x16   : > { %p2485_p10 = pneg %p2828_p8  ;;  %s2836_s29 = sadd.s32 1, %s2690_s21  }
  0x17   : > { %3205 = sst [smem:[#allocation15_spill]] %s2836_s29  ;;  %s36_s16 = ssub.s32 %s2690_s21, %s2836_s29 }
  0x18   : > { %p2840_p11 = pnand %p2485_p10, %p3184_p1  ;;  %p2846_p12 = scmp.eq.s32.totalorder %s36_s16, 0 }
  0x19   : > { %s39_s23 = sadd.s32 1, %s2686_s20  ;;  %p46_p13 = scmp.ne.s32.totalorder %s2686_s20, %s2682_s19 }
  0x1a   : > { %p2570_p0 = pneg %p2840_p11  ;;  %s2579_s27 = scalar_lea.vmem %s428_s28, 16 }
  0x1b   : > { %p2580_p3 = scmp.ne.s32.totalorder %s428_s28, %s2579_s27  ;;  %s2586_s25 = scalar_lea.vmem %s428_s28, 32 }
  0x1c   : > { %p2587_p9 = scmp.lt.s32.totalorder %s428_s28, %s428_s28  ;;  %p2588_p10 = scmp.lt.s32.totalorder %s2586_s25, %s2579_s27 }
  0x1d   : > { %p2582_p5 = pnand %p2580_p3, %p2570_p0 }
  0x1e   : > { %p2589_p1 = por %p2588_p10, %p2587_p9 }
  0x1f   : > { %p2583_p7 = pneg %p2582_p5 }
  0x21   : > { %p2590_p2 = pnand %p2589_p1, %p2583_p7 }
  0x23   : > { %2593 = shalt.err (!%p2590_p2)
}
  0x24   : > { %s3208_s10 = sld [smem:[#allocation17_spill]]  ;;  %p47_p1 = scmp.eq.s32.totalorder %s2690_s21, 0 }
  0x25   : > { %s2863_s25 = scalar_select %p2846_p12, %s2686_s20, %s39_s23  }
  0x26   : > { %p3210_p2 = scmp.eq.s32.totalorder %s2809_s22, 1  ;;  %p2498_p0 = scmp.lt.s32.totalorder %s2690_s21, 2 }
  0x27   : > { %3209 = sst [smem:[#allocation16_spill]] %s2863_s25  ;;  %s450_s30 = sand.u32 1, %s2686_s20  }
  0x28   : > { %p2871_p9 = por %p3210_p2, %p46_p13  ;;  %p48_p3 = por %p47_p1, %p46_p13 }
  0x29   : > { %s2308_s27 = sshll.u32 %s450_s30, 3  ;;  %s2309_s16 = sshll.u32 %s2690_s21, 7 }
  0x2a   : > { %2488 = dma.hbm_to_vmem [thread:$0]  (!%p2840_p11), %s3208_s10, 16, %s428_s28, [#allocation6]  }
  0x2b   : > { %s3211_s29 = scalar_select %p2871_p9, 1, 0 }
  0x2c   : > { %s2884_s28 = scalar_lea.hbm %s3167_s0, %s2309_s16  ;;  %s454_s17 = scalar_lea.vmem [#allocation2], %s2308_s27 }
  0x2d   : > { %s461_s23 = sshll.u32 %s454_s17, 4  ;;  %p2886_p11 = pnand %p2498_p0, %p48_p3  ;;  %s462_s23 = int_to_ptr.vmem [resolvable:$true] %s461_s23 }
  0x2e   : > { %s451_s25 = scalar_lea.sflag [#allocation3], %s450_s30  ;;  %s2594_s20 = scalar_lea.hbm %s2884_s28, 128 }
  0x2f   : > { %p2595_p12 = scmp.ne.s32.totalorder %s2884_s28, %s2594_s20  ;;  %p2596_p13 = pneg %p2886_p11 }
  0x30   : > { %s2599_s16 = scalar_lea.hbm %s3167_s0, 256  ;;  %p2600_p10 = scmp.lt.s32.totalorder %s2884_s28, %s3167_s0 }
  0x31   : > { %p2597_p5 = pnand %p2596_p13, %p2595_p12  ;;  %p2601_p1 = scmp.lt.s32.totalorder %s2599_s16, %s2594_s20 }
  0x33   : > { %p2598_p7 = pneg %p2597_p5  ;;  %p2602_p2 = por %p2601_p1, %p2600_p10 }
  0x35   : > { %p2603_p0 = pnand %p2602_p2, %p2598_p7 }
  0x37   : > { %2606 = shalt.err (!%p2603_p0)
}
  0x38   : > { %s2607_s17 = scalar_lea.vmem %s462_s23, 128  ;;  %s2693_s30 = smov [#allocation2]  }
  0x39   : > { %p2608_p3 = scmp.ne.s32.totalorder %s462_s23, %s2607_s17  ;;  %s2612_s14 = sshll.u32 %s2693_s30, 4  ;;  %s2613_s14 = int_to_ptr.vmem [resolvable:$false] %s2612_s14 }
  0x3a   : > { %s2614_s13 = scalar_lea.vmem %s2613_s14, 256  ;;  %p2615_p12 = scmp.lt.s32.totalorder %s462_s23, %s2613_s14 }
  0x3b   : > { %p2610_p6 = pnand %p2608_p3, %p2596_p13  ;;  %p2616_p5 = scmp.lt.s32.totalorder %s2614_s13, %s2607_s17 }
  0x3d   : > { %p2611_p9 = pneg %p2610_p6  ;;  %p2617_p4 = por %p2616_p5, %p2615_p12 }
  0x3f   : > { %p2618_p8 = pnand %p2617_p4, %p2611_p9 }
  0x41   : > { %2621 = shalt.err (!%p2618_p8)
}
  0x42   : > { %2492 = dma.hbm_to_vmem [thread:$0]  (!%p2886_p11), %s2884_s28, 128, %s462_s23, %s451_s25  }
  0x43   : > { %p3213_p7 = scmp.ne.s32.totalorder %s3204_s26, 0 }
  0x44   : > { %s2907_s20 = sand.u32 (!%p3213_p7), 1, %s2682_s19   ;;  %p3214_p4 = scmp.ne.s32.totalorder (!%p3213_p7), %s3201_s24, 0 }
  0x45   : > { %483 = sbr.rel (%p3213_p7) target bundleno = 2979 (0xba3), region = 80  ;;  %s2311_s21 = sshll.u32 (!%p3213_p7), %s2907_s20, 3 }
  0x46   : > { %s486_s14 = scalar_lea.sflag (!%p3213_p7), [#allocation3], %s2907_s20  ;;  %s2913_s13 = scalar_lea.vmem (!%p3213_p7), [#allocation2], %s2311_s21 }
  0x4a   : > { %2665 = dma.done.wait (%p3214_p4), %s486_s14, 128  }
  0x4b   : > { %2667 = vsyncadd (%p3214_p4), %s486_s14, 4294967168  ;;  %p3215_p6 = scmp.eq.s32.totalorder %s2809_s22, 0 }
  0x4d   : > { %2669 = dma.done.wait (%p3215_p6), [#allocation6], 16   ;;  %p3216_p8 = pmov %p3215_p6 }
  0x4e   : > { %p547_p9 = scmp.lt.s32.totalorder %s2809_s22, 1  ;;  %v2694_v0 = vmov 0   ;;  %v2695_v1 = vmov 0.0   ;;  %v568_v3 = vld [vmem:[%s3170_s3 + $0x18] sm:$0xff]  ;;  %vm2696_vm0 = vmmov 0   ;;  %v567_v5 = vld [vmem:[%s3170_s3 + $0x10] sm:$0xff]  ;;  %v1091_v26 = vlaneseq }
  0x4f   : > { %2671 = vsyncadd (%p3216_p8), [#allocation6], 4294967280  ;;  %2547 = vset.pattern.permute.xlu0 %v2694_v0  ;;  %2385 = vmatprep.subr.mxu0 %v2695_v1  ;;  %v566_v6 = vld [vmem:[%s3170_s3 + $0x8] sm:$0xff]  ;;  %v565_v7 = vld [vmem:[%s3170_s3] sm:$0xff]  ;;  %vm576_vm1 = vcmask 261120   ;;  %s2697_s25 = smov 112  }
  0x50   : > { %s2925_s10 = scalar_select %p547_p9, %s2809_s22, 1  ;;  %2396 = vmatprep.subr.mxu1 %v2695_v1  ;;  %2393 = vmatprep.mubr.msk.f32.mxu0 %vm2696_vm0, %v2695_v1  ;;  %v2954_v8 = vld [vmem:[%s2913_s13] sm:$0xff]  ;;  %vm797_vm2 = vcmask 64512   ;;  %v3002_v27 = vshrl.u32 %v1091_v26, 7  ;;  %vm1865_vm3 = vcmask 130048   ;;  %vm1867_vm4 = vcmask 195584  }
  0x51   : > { %2398 = vmatprep.mubr.msk.f32.mxu1 %vm2696_vm0, %v2695_v1  ;;  %2386 = vmatpush3.msra.mxu0 %v568_v3  ;;  %v2315_v11 = vld [vmem:[%s3171_s4] ss:$0 sm:$0xff]  ;;  %s2698_s13 = smov 120   ;;  %s2700_s23 = smov 96   ;;  %vm2084_vm5 = vcmask 523264  }
  0x52   : > { %s2314_s24 = sshll.u32 %s2925_s10, 3  ;;  %2387 = vmatprep.subr.mxu0 %v2695_v1  ;;  %s553_s16 = scalar_lea.vmem %s3169_s2, %s2925_s10  ;;  %v1093_v30 = vsub.s32 0, %v3002_v27 }
  0x53   : > { %s550_s28 = scalar_lea.vmem %s3168_s1, %s2314_s24  ;;  %2388 = vmatpush3.msra.mxu0 %v567_v5  ;;  %v556_v28 = vld [vmem:[%s553_s16] sm:$0x1]  ;;  %s2701_s10 = smov 64  }
  0x54   : > { %v555_v2 = vld [vmem:[%s550_s28] sm:$0xff]  ;;  %2389 = vmatprep.subr.mxu0 %v2695_v1  ;;  %s2699_s28 = smov 104   ;;  %v557_v29 = vmul.f32 -1e+30, %v556_v28  ;;  %s2706_s15 = smov 24  }
  0x55   : > { %v558_v4 = vsub.f32 1.0, %v555_v2  ;;  %2390 = vmatpush3.msra.mxu0 %v566_v6  ;;  %s3217_s14 = sld [smem:[#allocation18_spill]]  ;;  %s2190_s27 = scalar_lea.sflag [#allocation4], %s2907_s20 }
  0x56   : > { %2391 = vmatprep.subr.mxu0 %v2695_v1  ;;  %v1094_v31 = vrot.slane %v557_v29, %v1093_v30  ;;  %s3219_s16 = sld [smem:[#allocation20_spill]]  ;;  %p3220_p13 = scmp.ne.s32.totalorder %s3211_s29, 0 }
  0x57   : > { %561 = vperm.xlu0 %2547, %v558_v4   ;;  %2392 = vmatpush3.msra.mxu0 %v565_v7  ;;  %s2707_s30 = smov [#allocation7]  }
  0x58   : > { %2411 = vmatprep.subr.mxu0 %v2695_v1 }
  0xd2   : > { %v562_v9 = vpop.permute.xlu0 %561 }
  0xd3   : > { %v564_v10 = vmul.f32 %v562_v9, %v2954_v8 }
  0xd5   : > { %2394 = vmatmul.mubr.msk.f32.vlgmr.msra.gmra.mxu0 %vm576_vm1, %v564_v10 }
  0xd6   : > { %2413 = vmatprep.mubr.msk.f32.mxu0 %vm2696_vm0, %v2695_v1 }
 0x195   : > { %v646_v12 = vpop.f32.mrf.mxu0 }
 0x196   : > { %v2963_v13 = vadd.f32 %v2315_v11, %v646_v12 }
 0x197   : > { %v2395_v14 = vpop.f32.mrf.mxu0 }
 0x198   : > { %653 = vrot.lane.b32.xlu1 %v2963_v13, %s2697_s25  ;;  %651 = vrot.lane.b32.xlu0 %v2963_v13, %s2698_s13  ;;  %s3218_s25 = sld [smem:[#allocation19_spill]]  ;;  %s2342_s13 = sshll.u32 %s2809_s22, 7 }
 0x199   : > { %s2626_s22 = sshll.u32 %s2707_s30, 4  ;;  %s2627_s22 = int_to_ptr.vmem [resolvable:$false] %s2626_s22 }
 0x19c   : > { %655 = vrot.lane.b32.xlu1 %v2963_v13, %s2699_s28  ;;  %657 = vrot.lane.b32.xlu0 %v2963_v13, %s2700_s23  ;;  %s2704_s28 = smov 16  }
 0x20a   : > { %v2969_v15 = vpop.permute.xlu1 %653  ;;  %v2971_v16 = vpop.permute.xlu0 %651 }
 0x20b   : > { %661 = vrot.lane.b32.xlu0 %v2969_v15, %s2700_s23  ;;  %659 = vrot.lane.b32.xlu1 %v2971_v16, %s2700_s23 }
 0x20e   : > { %v2975_v17 = vpop.permute.xlu1 %655  ;;  %v658_v18 = vpop.permute.xlu0 %657 }
 0x20f   : > { %663 = vrot.lane.b32.xlu1 %v2975_v17, %s2700_s23  ;;  %s2705_s23 = smov 8  }
 0x229   : > { %669 = vxpose.xlu0.b32.start.end [1/1] (short) (narrow) %v658_v18, 8 }
 0x27d   : > { %v660_v19 = vpop.permute.xlu1 %659  ;;  %v662_v20 = vpop.permute.xlu0 %661 }
 0x27e   : > { %701 = vxpose.xlu1.b32.start.end [1/1] (short) (narrow) %v660_v19, 8  ;;  %733 = vxpose.xlu0.b32.start.end [1/1] (short) (narrow) %v662_v20, 8 }
 0x281   : > { %v664_v21 = vpop.permute.xlu1 %663 }
 0x282   : > { %765 = vxpose.xlu0.b32.start.end [1/1] (short) (narrow) %v664_v21, 8 }
 0x2a5   : > { %v685_v22 = vpop.trf.xlu0 }
 0x2a6   : > { %2397 = vmatpush3.msra.mxu1 %v685_v22 }
 0x2a7   : > { %2399 = vmatmul.mubr.msk.f32.vlgmr.msra.gmra.mxu1 %vm797_vm2, %v2963_v13  ;;  %2401 = vmatprep.subr.mxu1 %v2695_v1 }
 0x2a8   : > { %2403 = vmatprep.mubr.msk.f32.mxu1 %vm2696_vm0, %v2695_v1 }
 0x2fa   : > { %v717_v23 = vpop.trf.xlu1  ;;  %v749_v24 = vpop.trf.xlu0 }
 0x2fb   : > { %2402 = vmatpush3.msra.mxu1 %v717_v23 }
 0x2fc   : > { %2404 = vmatmul.mubr.msk.f32.vlgmr.msra.gmra.mxu1 %vm797_vm2, %v2971_v16  ;;  %2406 = vmatprep.subr.mxu1 %v2695_v1 }
 0x2fd   : > { %2407 = vmatpush3.msra.mxu1 %v749_v24  ;;  %2408 = vmatprep.mubr.msk.f32.mxu1 %vm2696_vm0, %v2695_v1 }
 0x2fe   : > { %v781_v25 = vpop.trf.xlu0  ;;  %2416 = vmatprep.subr.mxu1 %v2695_v1 }
 0x2ff   : > { %2412 = vmatpush3.msra.mxu0 %v781_v25 }
 0x300   : > { %2409 = vmatmul.mubr.msk.f32.vlgmr.msra.gmra.mxu1 %vm797_vm2, %v2969_v15  ;;  %2414 = vmatmul.mubr.msk.f32.vlgmr.msra.gmra.mxu0 %vm797_vm2, %v2975_v17 }
 0x301   : > { %2421 = vmatprep.subr.mxu0 %v2695_v1  ;;  %2423 = vmatprep.mubr.msk.f32.mxu0 %vm2696_vm0, %v2695_v1 }
 0x302   : > { %2418 = vmatprep.mubr.msk.f32.mxu1 %vm2696_vm0, %v2695_v1 }
 0x367   : > { %v866_v32 = vpop.f32.mrf.mxu1 }
 0x368   : > { %v1086_v33 = vmul.f32 0.35355338, %v866_v32 }
 0x369   : > { %v2400_v34 = vpop.f32.mrf.mxu1 }
 0x36a   : > { %v1096_v35 = vadd.f32 %v1094_v31, %v1086_v33 }
 0x36c   : > { %v1100_v36 = vsel %vm797_vm2, %v1096_v35, -inf }
 0x36d   : > { %1101 = vmax.xlane.f32.xlu0 %v1100_v36 }
 0x3bc   : > { %v938_v37 = vpop.f32.mrf.mxu1 }
 0x3bd   : > { %v1087_v38 = vmul.f32 0.35355338, %v938_v37 }
 0x3be   : > { %v2405_v39 = vpop.f32.mrf.mxu1 }
 0x3bf   : > { %v1097_v40 = vadd.f32 %v1094_v31, %v1087_v38  ;;  %v1872_v39 = vld [vmem:[%s3172_s5 + $0x18] sm:$0xff] }
 0x3c0   : > { %v1010_v41 = vpop.f32.mrf.mxu1  ;;  %v1082_v42 = vpop.f32.mrf.mxu0 }
 0x3c1   : > { %v1088_v43 = vmul.f32 0.35355338, %v1010_v41  ;;  %v1089_v44 = vmul.f32 0.35355338, %v1082_v42  ;;  %v1103_v45 = vsel %vm797_vm2, %v1097_v40, -inf }
 0x3c2   : > { %1104 = vmax.xlane.f32.xlu1 %v1103_v45  ;;  %v2410_v46 = vpop.f32.mrf.mxu1  ;;  %v2415_v47 = vpop.f32.mrf.mxu0  ;;  %v2703_v42 = vmov 1934713408  }
 0x3c3   : > { %v1098_v48 = vadd.f32 %v1094_v31, %v1088_v43  ;;  %v1099_v49 = vadd.f32 %v1094_v31, %v1089_v44  ;;  %v1751_v43 = vunpack.c.l.s4 %v2703_v42 }
 0x3c5   : > { %v1106_v50 = vsel %vm797_vm2, %v1098_v48, -inf  ;;  %v1109_v51 = vsel %vm797_vm2, %v1099_v49, -inf  ;;  %v1752_v47 = vunpack.c.0.s8 %v1751_v43 }
 0x3c6   : > { %1107 = vmax.xlane.f32.xlu1 %v1106_v50  ;;  %1110 = vmax.xlane.f32.xlu0 %v1109_v51 }
 0x3d7   : > { %1144 = vrot.lane.b32.xlu1 %v2963_v13, %s2701_s10 }
 0x3db   : > { %1148 = vrot.lane.b32.xlu1 %v2969_v15, %s2701_s10 }
 0x3dc   : > { %1146 = vrot.lane.b32.xlu0 %v2971_v16, %s2701_s10 }
 0x3e0   : > { %1150 = vrot.lane.b32.xlu0 %v2975_v17, %s2701_s10  ;;  %s2201_s10 = scalar_lea.hbm %s3219_s16, %s2342_s13 }
 0x3f6   : > { %v1102_v52 = vpop.xlane.xlu0 %1101 }
 0x3f7   : > { %v1112_v53 = vsub.f32 %v1096_v35, %v1102_v52 }
 0x3f9   : > { %v1116_v54 = vmul.f32 1.442695, %v1112_v53 }
 0x3fb   : > { %2548 = vpow2.f32 %v1116_v54 }
 0x408   : > { %v2549_v55 = vpop.eup %2548 }
 0x409   : > { %v1124_v56 = vsel %vm797_vm2, %v2549_v55, 0.0 }
 0x40a   : > { %1125 = vadd.xlane.f32.xlu1 %v1124_v56 }
 0x44b   : > { %v1105_v57 = vpop.xlane.xlu1 %1104 }
 0x44c   : > { %v1113_v58 = vsub.f32 %v1097_v40, %v1105_v57  ;;  %v2702_v40 = vmov 1983009808  }
 0x44d   : > { %v1719_v41 = vunpack.c.l.s4 %v2702_v40 }
 0x44e   : > { %v1118_v59 = vmul.f32 1.442695, %v1113_v58 }
 0x44f   : > { %v1108_v60 = vpop.xlane.xlu1 %1107  ;;  %v1111_v61 = vpop.xlane.xlu0 %1110  ;;  %v1720_v45 = vunpack.c.0.s8 %v1719_v41 }
 0x450   : > { %2550 = vpow2.f32 %v1118_v59  ;;  %v1114_v62 = vsub.f32 %v1098_v48, %v1108_v60  ;;  %v1115_v63 = vsub.f32 %v1099_v49, %v1111_v61 }
 0x451   : > { %v1723_v48 = vsub.s32 %v1720_v45, %v3002_v27 }
 0x452   : > { %v1120_v0 = vmul.f32 1.442695, %v1114_v62  ;;  %v1122_v2 = vmul.f32 1.442695, %v1115_v63 }
 0x453   : > { %v1145_v10 = vpop.permute.xlu1 %1144  ;;  %v1147_v12 = vpop.permute.xlu0 %1146 }
 0x454   : > { %2552 = vpow2.f32 %v1120_v0  ;;  %v1871_v0 = vld [vmem:[%s3172_s5 + $0x10] sm:$0xff] }
 0x455   : > { %2554 = vpow2.f32 %v1122_v2  ;;  %v1870_v2 = vld [vmem:[%s3172_s5 + $0x8] sm:$0xff] }
 0x457   : > { %v1149_v11 = vpop.permute.xlu1 %1148  ;;  %v1151_v14 = vpop.permute.xlu0 %1150 }
 0x45d   : > { %v2551_v3 = vpop.eup %2550 }
 0x45e   : > { %v1127_v4 = vsel %vm797_vm2, %v2551_v3, 0.0 }
 0x45f   : > { %1128 = vadd.xlane.f32.xlu0 %v1127_v4 }
 0x461   : > { %v2553_v5 = vpop.eup %2552 }
 0x462   : > { %v2555_v6 = vpop.eup %2554  ;;  %v1130_v7 = vsel %vm797_vm2, %v2553_v5, 0.0 }
 0x463   : > { %1131 = vadd.xlane.f32.xlu1 %v1130_v7  ;;  %v1133_v9 = vsel %vm797_vm2, %v2555_v6, 0.0 }
 0x464   : > { %1134 = vadd.xlane.f32.xlu0 %v1133_v9 }
 0x491   : > { %1188 = vxpose.xlu0.b32.start.end [1/1] (short) (narrow) %v1147_v12, 8 }
 0x493   : > { %v1126_v13 = vpop.xlane.xlu1 %1125 }
 0x494   : > { %2556 = vrcp.f32 %v1126_v13 }
 0x495   : > { %1220 = vxpose.xlu0.b32.start.end [1/1] (short) (narrow) %v1149_v11, 8  ;;  %v1869_v11 = vld [vmem:[%s3172_s5] sm:$0xff] }
 0x496   : > { %1156 = vxpose.xlu1.b32.start.end [1/1] (short) (narrow) %v1145_v10, 8 }
 0x49a   : > { %1252 = vxpose.xlu1.b32.start.end [1/1] (short) (narrow) %v1151_v14, 8 }
 0x4a1   : > { %v2557_v15 = vpop.eup %2556 }
 0x4a2   : > { %v1140_v16 = vmul.f32 %v2557_v15, %v2549_v55  ;;  %v1755_v55 = vsub.s32 %v1752_v47, %v3002_v27  ;;  %v1986_v47 = vld [vmem:[%s3176_s9 + $0x10] sm:$0xff] }
 0x4a4   : > { %2417 = vmatpush3.xpose.msk.msra.mxu1 %vm797_vm2, %v1140_v16 }
 0x4a5   : > { %2426 = vmatprep.subr.mxu1 %v2695_v1 }
 0x4e8   : > { %v1129_v17 = vpop.xlane.xlu0 %1128 }
 0x4e9   : > { %2558 = vrcp.f32 %v1129_v17 }
 0x4ec   : > { %v1132_v21 = vpop.xlane.xlu1 %1131 }
 0x4ed   : > { %v1135_v20 = vpop.xlane.xlu0 %1134 }
 0x4ee   : > { %2560 = vrcp.f32 %v1135_v20 }
 0x4ef   : > { %2562 = vrcp.f32 %v1132_v21 }
 0x4f6   : > { %v2559_v18 = vpop.eup %2558 }
 0x4f7   : > { %v1141_v19 = vmul.f32 %v2559_v18, %v2551_v3 }
 0x4f9   : > { %2422 = vmatpush3.xpose.msk.msra.mxu0 %vm797_vm2, %v1141_v19 }
 0x4fa   : > { %2431 = vmatprep.subr.mxu0 %v2695_v1 }
 0x4fb   : > { %v2561_v22 = vpop.eup %2560 }
 0x4fc   : > { %v1143_v24 = vmul.f32 %v2561_v22, %v2555_v6  ;;  %v2563_v25 = vpop.eup %2562 }
 0x4fd   : > { %v1142_v28 = vmul.f32 %v2563_v25, %v2553_v5 }
 0x50d   : > { %v1204_v23 = vpop.trf.xlu0 }
 0x50e   : > { %2424 = vmatmul.mubr.msk.f32.vlgmr.msra.gmra.mxu0 %vm797_vm2, %v1204_v23 }
 0x50f   : > { %2432 = vmatpush3.xpose.msk.msra.mxu0 %vm797_vm2, %v1143_v24  ;;  %2433 = vmatprep.mubr.msk.f32.mxu0 %vm2696_vm0, %v2695_v1 }
 0x510   : > { %2436 = vmatprep.subr.mxu0 %v2695_v1 }
 0x511   : > { %v1236_v29 = vpop.trf.xlu0 }
 0x512   : > { %v1172_v26 = vpop.trf.xlu1 }
 0x513   : > { %2419 = vmatmul.mubr.msk.f32.vlgmr.msra.gmra.mxu1 %vm797_vm2, %v1172_v26 }
 0x514   : > { %2427 = vmatpush3.xpose.msk.msra.mxu1 %vm797_vm2, %v1142_v28  ;;  %2428 = vmatprep.mubr.msk.f32.mxu1 %vm2696_vm0, %v2695_v1 }
 0x515   : > { %2458 = vmatprep.subr.mxu1 %v2695_v1 }
 0x516   : > { %v1268_v30 = vpop.trf.xlu1 }
 0x517   : > { %2429 = vmatmul.mubr.msk.f32.vlgmr.msra.gmra.mxu1 %vm797_vm2, %v1236_v29  ;;  %2434 = vmatmul.mubr.msk.f32.vlgmr.msra.gmra.mxu0 %vm797_vm2, %v1268_v30 }
 0x518   : > { %2444 = vmatprep.mubr.msk.f32.mxu0 %vm2696_vm0, %v2695_v1  ;;  %2474 = vmatprep.mubr.msk.f32.mxu1 %vm2696_vm0, %v2695_v1 }
 0x519   : > { %2437 = vmatpush3.msra.mxu0 %v1872_v39 }
 0x51a   : > { %2438 = vmatprep.subr.mxu0 %v2695_v1 }
 0x51b   : > { %2439 = vmatpush3.msra.mxu0 %v1871_v0  ;;  %v2070_v0 = vld [vmem:[%s3178_s11 + $0x8] sm:$0xff] }
 0x51c   : > { %2440 = vmatprep.subr.mxu0 %v2695_v1 }
 0x51d   : > { %2441 = vmatpush3.msra.mxu0 %v1870_v2  ;;  %v2069_v2 = vld [vmem:[%s3178_s11] sm:$0xff] }
 0x51e   : > { %2442 = vmatprep.subr.mxu0 %v2695_v1 }
 0x51f   : > { %2443 = vmatpush3.msra.mxu0 %v1869_v11 }
 0x520   : > { %2447 = vmatprep.subr.mxu0 %v2695_v1 }
 0x5ce   : > { %v1432_v31 = vpop.f32.mrf.mxu0 }
 0x5cf   : > { %1620 = vxpose.xlu1.b32.start.end [1/1] (short) (narrow) %v1432_v31, 8 }
 0x5d0   : > { %v2425_v32 = vpop.f32.mrf.mxu0 }
 0x5d3   : > { %v1356_v33 = vpop.f32.mrf.mxu1 }
 0x5d4   : > { %1588 = vxpose.xlu0.b32.start.end [1/1] (short) (narrow) %v1356_v33, 8 }
 0x5d5   : > { %v2420_v34 = vpop.f32.mrf.mxu1 }
 0x5d7   : > { %v1508_v35 = vpop.f32.mrf.mxu1  ;;  %v1584_v36 = vpop.f32.mrf.mxu0 }
 0x5d8   : > { %1652 = vxpose.xlu0.b32.start.end [1/1] (short) (narrow) %v1508_v35, 8  ;;  %1684 = vxpose.xlu1.b32.start.end [1/1] (short) (narrow) %v1584_v36, 8  ;;  %v2331_v35 = vld [vmem:[%s3173_s6] ss:$0 sm:$0xff] }
 0x5d9   : > { %v2430_v37 = vpop.f32.mrf.mxu1  ;;  %v2435_v38 = vpop.f32.mrf.mxu0 }
 0x64b   : > { %v1636_v44 = vpop.trf.xlu1 }
 0x650   : > { %v1604_v46 = vpop.trf.xlu0 }
 0x654   : > { %v1668_v49 = vpop.trf.xlu0  ;;  %v1700_v50 = vpop.trf.xlu1 }
 0x655   : > { %v1716_v51 = vcombine.low %v1604_v46, %v1668_v49  ;;  %v1717_v52 = vcombine.high %v1604_v46, %v1668_v49  ;;  %v1732_v53 = vcombine.low %v1636_v44, %v1700_v50  ;;  %v1733_v54 = vcombine.high %v1636_v44, %v1700_v50  ;;  %v1987_v46 = vld [vmem:[%s3176_s9 + $0x18] sm:$0xff]  ;;  %v2075_v50 = vld [vmem:[%s3178_s11 + $0x30] sm:$0xff] }
 0x656   : > { %v2076_v49 = vld [vmem:[%s3178_s11 + $0x38] sm:$0xff] }
 0x657   : > { %v1724_v56 = vrot.slane %v1716_v51, %v1723_v48  ;;  %v1731_v57 = vrot.slane %v1717_v52, %v1723_v48  ;;  %v1740_v58 = vrot.slane %v1732_v53, %v1723_v48  ;;  %v1747_v59 = vrot.slane %v1733_v54, %v1723_v48  ;;  %2459 = vmatpush3.msra.mxu1 %v2076_v49  ;;  %v2074_v51 = vld [vmem:[%s3178_s11 + $0x28] sm:$0xff]  ;;  %v2073_v52 = vld [vmem:[%s3178_s11 + $0x20] sm:$0xff]  ;;  %v2072_v53 = vld [vmem:[%s3178_s11 + $0x18] sm:$0xff] }
 0x658   : > { %2460 = vmatprep.subr.mxu1 %v2695_v1 }
 0x659   : > { %v1748_v60 = vcombine.low %v1724_v56, %v1740_v58  ;;  %v1749_v61 = vcombine.high %v1724_v56, %v1740_v58  ;;  %v1764_v62 = vcombine.low %v1731_v57, %v1747_v59  ;;  %v1765_v63 = vcombine.high %v1731_v57, %v1747_v59  ;;  %2461 = vmatpush3.msra.mxu1 %v2075_v50  ;;  %v2333_v58 = vld [vmem:[%s3174_s7] ss:$0 sm:$0xff] }
 0x65a   : > { %2462 = vmatprep.subr.mxu1 %v2695_v1 }
 0x65b   : > { %v1756_v3 = vrot.slane %v1748_v60, %v1755_v55  ;;  %v1763_v4 = vrot.slane %v1749_v61, %v1755_v55  ;;  %v1772_v5 = vrot.slane %v1764_v62, %v1755_v55  ;;  %v1779_v27 = vrot.slane %v1765_v63, %v1755_v55  ;;  %2463 = vmatpush3.msra.mxu1 %v2074_v51  ;;  %v2334_v60 = vld [vmem:[%s3175_s8] ss:$0 sm:$0xff]  ;;  %v2071_v63 = vld [vmem:[%s3178_s11 + $0x10] sm:$0xff] }
 0x65c   : > { %2464 = vmatprep.subr.mxu1 %v2695_v1 }
 0x65d   : > { %v1784_v6 = vcombine.low %v1756_v3, %v1763_v4  ;;  %v2329_v7 = vcombine.high %v1756_v3, %v1763_v4  ;;  %v1800_v9 = vcombine.low %v1772_v5, %v1779_v27  ;;  %v2330_v10 = vcombine.high %v1772_v5, %v1779_v27  ;;  %2465 = vmatpush3.msra.mxu1 %v2073_v52  ;;  %v2335_v3 = vld [vmem:[#allocation5] ss:$0 sm:$0xff] }
 0x65e   : > { %2466 = vmatprep.subr.mxu1 %v2695_v1 }
 0x65f   : > { %v1791_v12 = vrot.slane %v1784_v6, %v1723_v48  ;;  %v1799_v13 = vrot.slane %v2329_v7, %v1723_v48  ;;  %v1807_v14 = vrot.slane %v1800_v9, %v1723_v48  ;;  %v1815_v15 = vrot.slane %v2330_v10, %v1723_v48  ;;  %v1984_v48 = vld [vmem:[%s3176_s9] sm:$0xff]  ;;  %2467 = vmatpush3.msra.mxu1 %v2072_v53 }
 0x660   : > { %2468 = vmatprep.subr.mxu1 %v2695_v1  ;;  %v2337_v7 = vld [vmem:[%s3179_s12] ss:$0 sm:$0xff] }
 0x661   : > { %v1817_v16 = vcombine.high %v1791_v12, %v1799_v13  ;;  %v1833_v17 = vcombine.high %v1807_v14, %v1815_v15  ;;  %v1816_v18 = vcombine.low %v1791_v12, %v1799_v13  ;;  %v1832_v19 = vcombine.low %v1807_v14, %v1815_v15  ;;  %2469 = vmatpush3.msra.mxu1 %v2071_v63 }
 0x662   : > { %2470 = vmatprep.subr.mxu1 %v2695_v1 }
 0x663   : > { %v1831_v20 = vrot.slane %v1817_v16, %v1755_v55  ;;  %v1847_v21 = vrot.slane %v1833_v17, %v1755_v55  ;;  %v1824_v22 = vrot.slane %v1816_v18, %v1755_v55  ;;  %v1840_v23 = vrot.slane %v1832_v19, %v1755_v55  ;;  %2471 = vmatpush3.msra.mxu1 %v2070_v0 }
 0x664   : > { %2472 = vmatprep.subr.mxu1 %v2695_v1 }
 0x665   : > { %v1850_v24 = vcombine.low %v1831_v20, %v1847_v21  ;;  %v1849_v25 = vcombine.high %v1824_v22, %v1840_v23  ;;  %v1848_v26 = vcombine.low %v1824_v22, %v1840_v23  ;;  %v1851_v28 = vcombine.high %v1831_v20, %v1847_v21  ;;  %2473 = vmatpush3.msra.mxu1 %v2069_v2  ;;  %v2339_v22 = vld [vmem:[%s3217_s14] ss:$0 sm:$0xff] }
 0x667   : > { %1857 = vrot.lane.b32.xlu1 %v1850_v24, %s2704_s28  ;;  %1853 = vrot.lane.b32.xlu0 %v1849_v25, %s2705_s23  ;;  %v2340_v24 = vld [vmem:[%s3218_s25] ss:$0 sm:$0xff]  ;;  %s546_s28 = scalar_lea.vmem [#allocation7], %s2311_s21  ;;  %s2628_s21 = scalar_lea.vmem %s2627_s22, 256 }
 0x668   : > { %s2203_s23 = sshll.u32 %s546_s28, 4  ;;  %s2204_s23 = int_to_ptr.vmem [resolvable:$true] %s2203_s23 }
 0x669   : > { %s2622_s17 = scalar_lea.vmem %s2204_s23, 128  ;;  %p2629_p2 = scmp.lt.s32.totalorder %s2204_s23, %s2627_s22 }
 0x66a   : > { %p2623_p11 = scmp.ne.s32.totalorder %s2204_s23, %s2622_s17  ;;  %p2630_p0 = scmp.lt.s32.totalorder %s2628_s21, %s2622_s17 }
 0x66b   : > { %1861 = vrot.lane.b32.xlu1 %v1851_v28, %s2706_s15 }
 0x66c   : > { %p2624_p10 = pnand %p2623_p11, %p3220_p13  ;;  %p2631_p3 = por %p2630_p0, %p2629_p2 }
 0x66e   : > { %p2625_p1 = pneg %p2624_p10 }
 0x670   : > { %p2632_p12 = pnand %p2631_p3, %p2625_p1 }
 0x6d9   : > { %v1858_v29 = vpop.permute.xlu1 %1857  ;;  %v1854_v30 = vpop.permute.xlu0 %1853 }
 0x6da   : > { %v1864_v31 = vsel %vm797_vm2, %v1848_v26, %v1854_v30 }
 0x6db   : > { %v1866_v33 = vsel %vm1865_vm3, %v1864_v31, %v1858_v29 }
 0x6dd   : > { %v1862_v32 = vpop.permute.xlu1 %1861 }
 0x6de   : > { %v1868_v34 = vsel %vm1867_vm4, %v1866_v33, %v1862_v32 }
 0x6df   : > { %2445 = vmatmul.mubr.msk.f32.vlgmr.msra.gmra.mxu0 %vm576_vm1, %v1868_v34 }
 0x6e0   : > { %2455 = vmatprep.mubr.msk.f32.mxu0 %vm2696_vm0, %v2695_v1  ;;  %2448 = vmatpush3.msra.mxu0 %v1987_v46 }
 0x6e1   : > { %2449 = vmatprep.subr.mxu0 %v2695_v1 }
 0x6e2   : > { %2450 = vmatpush3.msra.mxu0 %v1986_v47 }
 0x6e3   : > { %2451 = vmatprep.subr.mxu0 %v2695_v1 }
 0x79f   : > { %v1949_v36 = vpop.f32.mrf.mxu0 }
 0x7a0   : > { %v1950_v37 = vadd.f32 %v2331_v35, %v1949_v36 }
 0x7a1   : > { %v2446_v38 = vpop.f32.mrf.mxu0 }
 0x7a2   : > { %v1953_v39 = vadd.f32 %v1950_v37, %v2954_v8  ;;  %v1985_v8 = vld [vmem:[%s3176_s9 + $0x8] sm:$0xff] }
 0x7a3   : > { %2452 = vmatpush3.msra.mxu0 %v1985_v8 }
 0x7a4   : > { %v1956_v40 = vsel %vm576_vm1, %v1953_v39, 0.0  ;;  %2453 = vmatprep.subr.mxu0 %v2695_v1 }
 0x7a5   : > { %1957 = vadd.xlane.f32.xlu1 %v1956_v40  ;;  %2454 = vmatpush3.msra.mxu0 %v1984_v48 }
 0x82e   : > { %v1958_v41 = vpop.xlane.xlu1 %1957 }
 0x82f   : > { %v1960_v42 = vmul.f32 0.03125, %v1958_v41 }
 0x831   : > { %v1961_v43 = vsub.f32 %v1953_v39, %v1960_v42 }
 0x833   : > { %v1962_v44 = vmul.f32 %v1961_v43, %v1961_v43 }
 0x835   : > { %v1963_v45 = vsel %vm576_vm1, %v1962_v44, 0.0 }
 0x836   : > { %1964 = vadd.xlane.f32.xlu0 %v1963_v45 }
 0x8bf   : > { %v1965_v54 = vpop.xlane.xlu0 %1964 }
 0x8c0   : > { %v1966_v55 = vmul.f32 0.03125, %v1965_v54 }
 0x8c2   : > { %v1967_v56 = vadd.f32 1e-05, %v1966_v55 }
 0x8c4   : > { %2564 = vrsqrt.f32 %v1967_v56 }
 0x8d1   : > { %v2565_v57 = vpop.eup %2564 }
 0x8d2   : > { %v1969_v59 = vmul.f32 %v2565_v57, %v1961_v43 }
 0x8d4   : > { %v1976_v61 = vmul.f32 %v2333_v58, %v1969_v59 }
 0x8d6   : > { %v1983_v62 = vadd.f32 %v2334_v60, %v1976_v61 }
 0x8d8   : > { %2456 = vmatmul.mubr.msk.f32.vlgmr.msra.gmra.mxu0 %vm576_vm1, %v1983_v62 }
 0x998   : > { %v2064_v4 = vpop.f32.mrf.mxu0 }
 0x999   : > { %v2065_v5 = vadd.f32 %v2335_v3, %v2064_v4 }
 0x99a   : > { %v2457_v27 = vpop.f32.mrf.mxu0 }
 0x99b   : > { %v2068_v6 = vmax.f32 %v2065_v5, 0.0 }
 0x99d   : > { %2475 = vmatmul.mubr.msk.f32.vlgmr.msra.gmra.mxu1 %vm2084_vm5, %v2068_v6 }
 0xa5d   : > { %v2154_v9 = vpop.f32.mrf.mxu1 }
 0xa5e   : > { %v2155_v10 = vadd.f32 %v2337_v7, %v2154_v9 }
 0xa5f   : > { %v2476_v11 = vpop.f32.mrf.mxu1 }
 0xa60   : > { %v2158_v12 = vadd.f32 %v2155_v10, %v1983_v62 }
 0xa62   : > { %v2161_v13 = vsel %vm576_vm1, %v2158_v12, 0.0 }
 0xa63   : > { %2162 = vadd.xlane.f32.xlu0 %v2161_v13 }
 0xaec   : > { %v2163_v1 = vpop.xlane.xlu0 %2162 }
 0xaed   : > { %v2164_v14 = vmul.f32 0.03125, %v2163_v1 }
 0xaef   : > { %v2165_v15 = vsub.f32 %v2158_v12, %v2164_v14 }
 0xaf1   : > { %v2166_v16 = vmul.f32 %v2165_v15, %v2165_v15 }
 0xaf3   : > { %v2167_v17 = vsel %vm576_vm1, %v2166_v16, 0.0 }
 0xaf4   : > { %2168 = vadd.xlane.f32.xlu1 %v2167_v17 }
 0xb7d   : > { %v2169_v18 = vpop.xlane.xlu1 %2168 }
 0xb7e   : > { %v2170_v19 = vmul.f32 0.03125, %v2169_v18 }
 0xb80   : > { %v2171_v20 = vadd.f32 1e-05, %v2170_v19 }
 0xb82   : > { %2566 = vrsqrt.f32 %v2171_v20 }
 0xb8f   : > { %v2567_v21 = vpop.eup %2566 }
 0xb90   : > { %v2173_v23 = vmul.f32 %v2567_v21, %v2165_v15 }
 0xb92   : > { %v2180_v25 = vmul.f32 %v2339_v22, %v2173_v23 }
 0xb94   : > { %v2187_v26 = vadd.f32 %v2340_v24, %v2180_v25 }
 0xb96   : > { %2188 = vst.msk [vmem:[%s546_s28] sm:$0xff] %vm576_vm1, %v2187_v26 }
 0xb97   : > { %2635 = shalt.err (!%p2632_p12)
}
 0xb98   : > { %s2636_s14 = scalar_lea.hbm %s2201_s10, 128  ;;  %s2640_s26 = scalar_lea.hbm %s3219_s16, 256 }
 0xb99   : > { %p2637_p5 = scmp.ne.s32.totalorder %s2201_s10, %s2636_s14  ;;  %p2641_p6 = scmp.lt.s32.totalorder %s2201_s10, %s3219_s16 }
 0xb9a   : > { %p2642_p8 = scmp.lt.s32.totalorder %s2640_s26, %s2636_s14 }
 0xb9b   : > { %p2638_p7 = pnand %p2637_p5, %p3220_p13 }
 0xb9c   : > { %p2643_p9 = por %p2642_p8, %p2641_p6 }
 0xb9d   : > { %p2639_p4 = pneg %p2638_p7 }
 0xb9f   : > { %p2644_p11 = pnand %p2643_p9, %p2639_p4 }
 0xba1   : > { %2647 = shalt.err (!%p2644_p11)
}
 0xba2   : > { %2483 = dma.vmem_to_hbm [thread:$0]  (%p3220_p13), %s2204_s23, 128, %s2201_s10, %s2190_s27  }
 0xba3 PF: > { %s3221_s28 = sld [smem:[#allocation11_spill]] }
 0xba4   : > { %s3222_s15 = sld [smem:[#allocation14_spill]] }
 0xba5   : > { %s3223_s18 = sld [smem:[#allocation13_spill]] }
 0xba9   : > { %s2215_s17 = sand.u32 1, %s3221_s28  }
 0xbaa   : > { %p3224_p10 = scmp.ne.s32.totalorder %s3222_s15, 0  ;;  %s2216_s30 = scalar_lea.sflag [#allocation4], %s2215_s17 }
 0xbab   : > { %p3225_p1 = scmp.ge.s32.totalorder %s3223_s18, 2 }
 0xbad   : > { %p2494_p2 = pnand %p3225_p1, %p3224_p10 }
 0xbaf   : > { %p2495_p0 = pneg %p2494_p2 }
 0xbb1   : > { %2673 = dma.done.wait (%p2495_p0), %s2216_s30, 128  }
 0xbb2   : > { %2675 = vsyncadd (%p2495_p0), %s2216_s30, 4294967168  ;;  %s3226_s21 = sld [smem:[#allocation15_spill]]  ;;  %s3229_s18 = smov %s2682_s19 }
 0xbb3   : > { %s3227_s22 = sld [smem:[#allocation12_spill]] }
 0xbb4   : > { %s3228_s20 = sld [smem:[#allocation16_spill]] }
 0xbb8   : > { %p29_p3 = scmp.ge.s32.totalorder %s3226_s21, 4  }
 0xbb9   : > { %s3230_s19 = smov %s3227_s22 }
 0xbba   :  { %31 = sbr.rel (!%p29_p3) target bundleno = 11 (0xb), region = 135 }
 0xbbf   :  { %2221 = vsyncpa [#allocation3], 1 }
 0xbc0   :  { %2223 = vsyncpa [#allocation3 + $0x1], 1 }
 0xbc1   :  { %2224 = vsyncpa [#allocation6], 1 }
 0xbc2   :  { %2225 = vsyncpa [#allocation4], 1 }
 0xbc3   :  { %2227 = vsyncpa [#allocation4 + $0x1], 1 }

</bundles_post_ra>
